<compile_context>
chip_gen: v5e
topology: v5e:2x2
jax: 0.10.0
libtpu: 0.0.40
codegen_flags: <defaults>
</compile_context>

<pallas_src>
import functools

import jax
import jax.numpy as jnp
from jax.experimental import pallas as pl
from jax.experimental.pallas import tpu as pltpu


_TAPS = tuple((dy, dx) for dy in (-1, 0, 1) for dx in (-1, 0, 1))
_VMEM_SPEC = pl.BlockSpec(memory_space=pltpu.MemorySpace.VMEM)


# ---------------------------------------------------------------------------
# pltpu.roll direction self-check (runs once; makes the shift math robust to
# either roll convention without affecting steady-state performance).
# ---------------------------------------------------------------------------
def _roll_probe_kernel(x_ref, o_ref):
    o_ref[...] = pltpu.roll(x_ref[...], 1, axis=1)


@functools.lru_cache(maxsize=1)
def _roll_matches_numpy() -> bool:
    """True iff pltpu.roll(x, s, axis)[..., i] == x[..., (i - s) % n] (np.roll)."""
    x = jnp.broadcast_to(jnp.arange(128, dtype=jnp.float32), (8, 128))
    out = pl.pallas_call(
        _roll_probe_kernel,
        out_shape=jax.ShapeDtypeStruct((8, 128), jnp.float32),
        in_specs=[_VMEM_SPEC],
        out_specs=_VMEM_SPEC,
    )(x)
    return bool(out[0, 0] == 127.0)


# ---------------------------------------------------------------------------
# Fused two-layer conv+ReLU kernel (everything resident in VMEM / vregs).
# ---------------------------------------------------------------------------
def _make_fused_kernel(n_batch, height, width, np_roll_semantics):
    hw = height * width

    def kernel(x_ref, w1_ref, b1_ref, w2_ref, b2_ref, o_ref):
        # Per-tap boundary masks (implement the zero padding); computed once,
        # shared by both layers and all batch items.
        pos = jax.lax.broadcasted_iota(jnp.int32, (1, hw), 1)
        row = pos // width
        col = pos % width
        masks = []
        for dy, dx in _TAPS:
            m = None
            if dy != 0:
                m = (row >= 1) if dy < 0 else (row <= height - 2)
            if dx != 0:
                c = (col >= 1) if dx < 0 else (col <= width - 2)
                m = c if m is None else jnp.logical_and(m, c)
            masks.append(None if m is None else m.astype(jnp.float32))

        def shifted(act, s):
            # shifted[:, p] == act[:, p + s] wherever that index is in range
            # (wrapped lanes are zeroed by the mask above).
            if s == 0:
                return act
            amt = (-s) % hw if np_roll_semantics else s % hw
            return pltpu.roll(act, amt, axis=1)

        def conv3x3_bias_relu(act, w_ref, b_ref):
            n_out = w_ref.shape[1]
            acc = jnp.zeros((n_out, hw), jnp.float32)
            for t, (dy, dx) in enumerate(_TAPS):
                sh = shifted(act, dy * width + dx)
                if masks[t] is not None:
                    sh = sh * masks[t]
                # (OC, Cin) @ (Cin, HW) -> (OC, HW): lane-dense result.
                acc = acc + jnp.dot(w_ref[t], sh,
                                    preferred_element_type=jnp.float32)
            return jnp.maximum(acc + b_ref[...], 0.0)

        for n in range(n_batch):                      # N is tiny -> unrolled.
            h1 = conv3x3_bias_relu(x_ref[n], w1_ref, b1_ref)
            h2 = conv3x3_bias_relu(h1, w2_ref, b2_ref)
            o_ref[n] = h2.astype(o_ref.dtype)         # full-lane (HW) store.

    return kernel


def make_base_conv_forward(n_batch, c_in, c_out, height, width):
    """Builds a jitted fused BaseConv forward for the given static shapes."""
    kernel = _make_fused_kernel(n_batch, height, width, _roll_matches_numpy())
    hw = height * width

    @jax.jit
    def forward(x, w1, b1, w2, b2):
        # Free reshapes only -- no NCHW<->NHWC transposes, no im2col.
        x2 = x.reshape(n_batch, c_in, hw)
        w1t = jnp.transpose(w1.reshape(c_out, c_in, 9), (2, 0, 1))   # (9, OC, Cin)
        w2t = jnp.transpose(w2.reshape(c_out, c_out, 9), (2, 0, 1))  # (9, OC, OC)
        b1c = b1.reshape(c_out, 1)
        b2c = b2.reshape(c_out, 1)
        out = pl.pallas_call(
            kernel,
            out_shape=jax.ShapeDtypeStruct((n_batch, c_out, hw), jnp.float32),
            in_specs=[_VMEM_SPEC] * 5,
            out_specs=_VMEM_SPEC,
        )(x2, w1t, b1c, w2t, b2c)
        return out.reshape(n_batch, c_out, height, width)

    return forward


# ---------------------------------------------------------------------------
# Deterministic PyTorch-style parameter init (synthetic weights).
# ---------------------------------------------------------------------------
def init_params(key, in_channels, out_channels, kernel_size):
    k1, k2, k3, k4 = jax.random.split(key, 4)

    def conv_init(kw, kb, cin, cout, ks):
        fan_in = cin * ks * ks
        bound = 1.0 / jnp.sqrt(fan_in)
        w = jax.random.uniform(kw, (cout, cin, ks, ks), jnp.float32,
                               -bound, bound)
        b = jax.random.uniform(kb, (cout,), jnp.float32, -bound, bound)
        return w, b

    w1, b1 = conv_init(k1, k2, in_channels, out_channels, kernel_size)
    w2, b2 = conv_init(k3, k4, out_channels, out_channels, kernel_size)
    return w1, b1, w2, b2


if __name__ == "__main__":
    # BaseConv(in_channels=4, out_channels=8, kernel_size=3, padding=1, stride=1)
    in_channels, out_channels, kernel_size = 4, 8, 3
    padding_arg, stride_arg = 1, 1
    # Reproduce the positional-arg swap of the reference module:
    #   nn.Conv2d(in, out, k, padding, stride) => stride=padding_arg, padding=stride_arg
    stride_eff, padding_eff = padding_arg, stride_arg
    assert stride_eff == 1 and padding_eff == 1 and kernel_size == 3, (
        "fused kernel is specialized to the module's effective 3x3/s1/p1 config")

    N, H, W = 2, 16, 16
    key = jax.random.PRNGKey(0)
    kx, kp = jax.random.split(key)
    x = jax.random.normal(kx, (N, in_channels, H, W), jnp.float32)
    w1, b1, w2, b2 = init_params(kp, in_channels, out_channels, kernel_size)

    forward = make_base_conv_forward(N, in_channels, out_channels, H, W)
    out = forward(x, w1, b1, w2, b2)
    jax.block_until_ready(out)

    # Sanity check against a pure-JAX reference (lax conv).
    def ref_conv_relu(xa, w, b, stride, padding):
        y = jax.lax.conv_general_dilated(
            xa, w, window_strides=(stride, stride),
            padding=[(padding, padding), (padding, padding)],
            dimension_numbers=("NCHW", "OIHW", "NCHW"),
            precision=jax.lax.Precision.HIGHEST)
        return jnp.maximum(y + b[None, :, None, None], 0.0)

    ref = ref_conv_relu(ref_conv_relu(x, w1, b1, stride_eff, padding_eff),
                        w2, b2, stride_eff, padding_eff)
    assert out.shape == ref.shape == (N, out_channels, H, W)
    assert jnp.allclose(out, ref, atol=2e-4, rtol=2e-4)

    print("KERNEL_OK")
</pallas_src>

<mosaic_0001>
module attributes {stable_mosaic.version = 11 : i64} {
  func.func @_roll_probe_kernel(%arg0: memref<8x128xf32, #tpu.memory_space<vmem>>, %arg1: memref<8x128xf32, #tpu.memory_space<vmem>>) attributes {dimension_semantics = [], scalar_prefetch = 0 : i64, scratch_operands = 0 : i64, tpu.core_type = #tpu.core_type<tc>} {
    %c0 = arith.constant 0 : index
    %c0_0 = arith.constant 0 : index
    %0 = vector.load %arg0[%c0, %c0_0] : memref<8x128xf32, #tpu.memory_space<vmem>>, vector<8x128xf32>
    %c1_i32 = arith.constant 1 : i32
    %1 = tpu.dynamic_rotate %0 by %c1_i32 dim 1 : vector<8x128xf32>, i32 -> vector<8x128xf32>
    %c0_1 = arith.constant 0 : index
    %c0_2 = arith.constant 0 : index
    %2 = vector.load %arg1[%c0_1, %c0_2] : memref<8x128xf32, #tpu.memory_space<vmem>>, vector<8x128xf32>
    tpu.vector_store %arg1[%c0_1, %c0_2], %1 {strides = array<i32>} : memref<8x128xf32, #tpu.memory_space<vmem>>, vector<8x128xf32>,
    return
  }
}

</mosaic_0001>

<bundles_post_ra>
// kernel: tpu_custom_call.1
= control target key start
LH: loop header
LB: loop body
LE: loop exit
PB: predicated region body
PF: predicated region fallthrough
CT: control target
= control target key end

     0   :  { %6 = vsyncpa [#allocation3], 0  ;;  %s118_s0 = inlined_call_operand.hbm [shape: f32[8,128], index: 0, kind: input, shape index: {}]   ;;  %s119_s1 = inlined_call_operand.hbm [shape: f32[8,128], index: 1, kind: output, shape index: {}]  }
   0x1   :  { %7 = vsyncpa [#allocation4], 0  ;;  %s13_s8 = sshll.u32 %s118_s0, 4  ;;  %s99_s9 = smov [#allocation2]   ;;  %s14_s8 = int_to_ptr.hbm [resolvable:$true] %s13_s8 }
   0x2   :  { %s15_s10 = sshll.u32 %s99_s9, 4  ;;  %s16_s10 = int_to_ptr.vmem [resolvable:$true] %s15_s10 }
   0x3   :  { %18 = dma.hbm_to_vmem [thread:$0]  %s14_s8, 128, %s16_s10, [#allocation3]  }
   0x4   :  { %95 = dma.done.wait [#allocation3], 128  }
   0x5   :  { %96 = vsyncadd [#allocation3], 4294967168  ;;  %v23_v0 = vld [vmem:[#allocation2] sm:$0xff]  ;;  %s100_s11 = smov 1   ;;  %s101_s12 = smov [#allocation5]  }
   0x6   :  { %24 = vrot.lane.b32.xlu0 %v23_v0, %s100_s11  ;;  %s32_s13 = sshll.u32 %s101_s12, 4  ;;  %s34_s16 = sshll.u32 %s119_s1, 4  ;;  %s33_s13 = int_to_ptr.vmem [resolvable:$true] %s32_s13  ;;  %s35_s16 = int_to_ptr.hbm [resolvable:$true] %s34_s16 }
  0x78   :  { %v25_v1 = vpop.permute.xlu0 %24 }
  0x79   :  { %26 = vst [vmem:[#allocation5] sm:$0xff] %v25_v1 }
  0x7a   :  { %37 = dma.vmem_to_hbm [thread:$0]  %s33_s13, 128, %s35_s16, [#allocation4]  }
  0x7b   :  { %97 = dma.done.wait [#allocation4], 128  }
  0x7c   :  { %98 = vsyncadd [#allocation4], 4294967168 }
  0x7d   :  { %42 = vsyncpa [#allocation3], 1 }
  0x7e   :  { %43 = vsyncpa [#allocation4], 1 }

</bundles_post_ra>
